<compile_context>
chip_gen: v7x
topology: tpu7x:2x2x1
jax: 0.10.0
libtpu: 0.0.40
codegen_flags: <defaults>
</compile_context>

<pallas_src>
import functools
import math

import jax
import jax.numpy as jnp
from jax.experimental import pallas as pl
from jax.experimental.pallas import tpu as pltpu

LANE = 128


def _round_up(a, m):
    return ((a + m - 1) // m) * m


def classifier_kernel(x_ref, y_ref, w1_ref, b1_ref, w2_ref, b2_ref, w3_ref, b3_ref,
                      loss_ref, pred_ref, logits_ref, *, batch, num_classes, tile_b):
    x = x_ref[...]                                                      # (TB, F) bf16

    # lin1 -> ReLU   (dropout is identity in eval mode)
    h1 = jnp.dot(x, w1_ref[...], preferred_element_type=jnp.float32) + b1_ref[...]
    h1 = jnp.maximum(h1, 0.0).astype(jnp.bfloat16)

    # lin2 -> ReLU
    h2 = jnp.dot(h1, w2_ref[...], preferred_element_type=jnp.float32) + b2_ref[...]
    h2 = jnp.maximum(h2, 0.0).astype(jnp.bfloat16)

    # lin3 -> logits (class dim padded to a full 128-lane slab; padded cols are 0*x + 0)
    logits = jnp.dot(h2, w3_ref[...], preferred_element_type=jnp.float32) + b3_ref[...]
    logits_ref[...] = logits                                            # lane-dense store

    cp = logits.shape[-1]
    lane = jax.lax.broadcasted_iota(jnp.int32, (tile_b, cp), 1)
    valid_c = lane < num_classes
    z = jnp.where(valid_c, logits, jnp.float32(-1e30))                  # mask padded classes

    # log_softmax(dim=-1), max-stabilized; the row max is reused for the argmax below.
    m = jnp.max(z, axis=-1, keepdims=True)
    lse = m + jnp.log(jnp.sum(jnp.exp(z - m), axis=-1, keepdims=True))
    logp = z - lse

    # NLL (sum over this tile only; mean divisor applied in the wrapper).
    y = y_ref[...]                                                      # (TB, 1) i32
    row = jax.lax.broadcasted_iota(jnp.int32, (tile_b, 1), 0)
    row_valid = (pl.program_id(0) * tile_b + row) < batch               # mask padded rows
    onehot = jnp.logical_and(lane == y, valid_c)
    picked = jnp.sum(jnp.where(onehot, logp, 0.0), axis=-1, keepdims=True)   # (TB, 1)
    tile_loss = -jnp.sum(jnp.where(row_valid, picked, 0.0),
                         axis=(0, 1), keepdims=True)                    # (1, 1)
    loss_ref[...] = jnp.broadcast_to(tile_loss, (1, LANE))

    # pred = argmax over classes (first occurrence on ties, like torch.max).
    is_max = jnp.logical_and(z == m, valid_c)
    pred = jnp.min(jnp.where(is_max, lane, cp), axis=-1, keepdims=True)
    pred_ref[...] = pred.astype(jnp.int32)


def classifier_forward(x, y, params, *, tile_b=256):
    """Fused ClassifierO forward (eval mode). Returns (loss, pred, logits)."""
    B, F = x.shape
    H1 = params["w1"].shape[1]
    H2 = params["w2"].shape[1]
    C = params["w3"].shape[1]
    CP = _round_up(C, LANE)                       # pad classes to a full lane register

    # Batch tile: big enough to amortize per-step overhead, multiple of 8 sublanes.
    TB = min(tile_b, _round_up(B, 8))
    B_pad = _round_up(B, TB)
    NT = B_pad // TB

    # Pad + cast inputs/weights. MXU operands are bf16; biases stay f32.
    x_p = jnp.zeros((B_pad, F), jnp.bfloat16).at[:B].set(x.astype(jnp.bfloat16))
    y_p = jnp.zeros((B_pad, 1), jnp.int32).at[:B, 0].set(y.astype(jnp.int32))
    w1 = params["w1"].astype(jnp.bfloat16)
    w2 = params["w2"].astype(jnp.bfloat16)
    w3 = jnp.zeros((H2, CP), jnp.bfloat16).at[:, :C].set(params["w3"].astype(jnp.bfloat16))
    b1 = params["b1"].astype(jnp.float32)
    b2 = params["b2"].astype(jnp.float32)
    b3 = jnp.zeros((1, CP), jnp.float32).at[:, :C].set(params["b3"].astype(jnp.float32))

    kernel = functools.partial(classifier_kernel, batch=B, num_classes=C, tile_b=TB)

    flops = 2 * B_pad * (F * H1 + H1 * H2 + H2 * CP)
    bytes_accessed = (x_p.size * 2 + y_p.size * 4
                      + (w1.size + w2.size + w3.size) * 2
                      + (b1.size + b2.size + b3.size) * 4
                      + NT * LANE * 4 + B_pad * 4 + B_pad * CP * 4)

    batched = lambda i: (i, 0)     # tiles that walk the batch grid axis
    resident = lambda i: (0, 0)    # weights/biases: same block every step -> stay in VMEM

    loss_parts, pred, logits_p = pl.pallas_call(
        kernel,
        grid=(NT,),
        in_specs=[
            pl.BlockSpec((TB, F), batched),     # x
            pl.BlockSpec((TB, 1), batched),     # y
            pl.BlockSpec((F, H1), resident),    # w1
            pl.BlockSpec((1, H1), resident),    # b1
            pl.BlockSpec((H1, H2), resident),   # w2
            pl.BlockSpec((1, H2), resident),    # b2
            pl.BlockSpec((H2, CP), resident),   # w3 (class-padded)
            pl.BlockSpec((1, CP), resident),    # b3 (class-padded)
        ],
        out_specs=(
            pl.BlockSpec((1, LANE), batched),   # per-tile loss partial sums (lane-dense)
            pl.BlockSpec((TB, 1), batched),     # pred
            pl.BlockSpec((TB, CP), batched),    # logits (lane-dense, class-padded)
        ),
        out_shape=(
            jax.ShapeDtypeStruct((NT, LANE), jnp.float32),
            jax.ShapeDtypeStruct((B_pad, 1), jnp.int32),
            jax.ShapeDtypeStruct((B_pad, CP), jnp.float32),
        ),
        compiler_params=pltpu.CompilerParams(
            dimension_semantics=("parallel",)),
        cost_estimate=pl.CostEstimate(
            flops=flops,
            transcendentals=B_pad * CP,
            bytes_accessed=bytes_accessed),
    )(x_p, y_p, w1, b1, w2, b2, w3, b3)

    loss = jnp.sum(loss_parts[:, 0]) / jnp.float32(B)   # mean NLL over real rows
    return loss, pred[:B, 0], logits_p[:B, :C]


def init_params(key, nhid, num_classes):
    """Deterministic PyTorch-Linear-style init: U(-1/sqrt(fan_in), 1/sqrt(fan_in))."""
    dims = [(nhid * 5, nhid * 2), (nhid * 2, nhid // 2), (nhid // 2, num_classes)]
    params = {}
    for i, (fan_in, fan_out) in enumerate(dims, start=1):
        key, kw, kb = jax.random.split(key, 3)
        bound = 1.0 / math.sqrt(fan_in)
        params[f"w{i}"] = jax.random.uniform(
            kw, (fan_in, fan_out), jnp.float32, -bound, bound)
        params[f"b{i}"] = jax.random.uniform(
            kb, (1, fan_out), jnp.float32, -bound, bound)
    return params


if __name__ == "__main__":
    nhid = 32
    num_classes = 4
    batch = 8

    key = jax.random.PRNGKey(0)
    key, kx, ky, kp = jax.random.split(key, 4)

    x = jax.random.normal(kx, (batch, nhid * 5), dtype=jnp.float32)
    y = jax.random.randint(ky, (batch,), 0, num_classes, dtype=jnp.int32)
    params = init_params(kp, nhid, num_classes)

    loss, pred, logits = classifier_forward(x, y, params)
    jax.block_until_ready((loss, pred, logits))

    assert logits.shape == (batch, num_classes)
    assert pred.shape == (batch,)
    assert bool(jnp.isfinite(loss))

    # Internal consistency: loss/pred must match log_softmax/argmax of the kernel's own logits.
    logp_ref = jax.nn.log_softmax(logits, axis=-1)
    loss_ref = -jnp.mean(logp_ref[jnp.arange(batch), y])
    assert bool(jnp.allclose(loss, loss_ref, atol=1e-4, rtol=1e-4))
    assert bool(jnp.all(pred == jnp.argmax(logits, axis=-1)))

    print("KERNEL_OK")
</pallas_src>

<mosaic_0001>
module attributes {stable_mosaic.version = 11 : i64} {
  func.func @classifier_kernel(%arg0: i32, %arg1: memref<8x160xbf16, #tpu.memory_space<vmem>>, %arg2: memref<8x1xi32, #tpu.memory_space<vmem>>, %arg3: memref<160x64xbf16, #tpu.memory_space<vmem>>, %arg4: memref<1x64xf32, #tpu.memory_space<vmem>>, %arg5: memref<64x16xbf16, #tpu.memory_space<vmem>>, %arg6: memref<1x16xf32, #tpu.memory_space<vmem>>, %arg7: memref<16x128xbf16, #tpu.memory_space<vmem>>, %arg8: memref<1x128xf32, #tpu.memory_space<vmem>>, %arg9: memref<1x128xf32, #tpu.memory_space<vmem>>, %arg10: memref<8x1xi32, #tpu.memory_space<vmem>>, %arg11: memref<8x128xf32, #tpu.memory_space<vmem>>) attributes {dimension_semantics = [#tpu.dimension_semantics<parallel>], iteration_bounds = array<i64: 1>, scalar_prefetch = 0 : i64, scratch_operands = 0 : i64, tpu.core_type = #tpu.core_type<tc>, window_params = [{transform_indices = @transform_0, window_bounds = array<i64: 8, 160>}, {transform_indices = @transform_1, window_bounds = array<i64: 8, 1>}, {pipeline_mode = #tpu.pipeline_mode<synchronous>, transform_indices = @transform_2, window_bounds = array<i64: 160, 64>}, {pipeline_mode = #tpu.pipeline_mode<synchronous>, transform_indices = @transform_3, window_bounds = array<i64: 1, 64>}, {pipeline_mode = #tpu.pipeline_mode<synchronous>, transform_indices = @transform_4, window_bounds = array<i64: 64, 16>}, {pipeline_mode = #tpu.pipeline_mode<synchronous>, transform_indices = @transform_5, window_bounds = array<i64: 1, 16>}, {pipeline_mode = #tpu.pipeline_mode<synchronous>, transform_indices = @transform_6, window_bounds = array<i64: 16, 128>}, {pipeline_mode = #tpu.pipeline_mode<synchronous>, transform_indices = @transform_7, window_bounds = array<i64: 1, 128>}, {transform_indices = @transform_8, window_bounds = array<i64: 1, 128>}, {transform_indices = @transform_9, window_bounds = array<i64: 8, 1>}, {transform_indices = @transform_10, window_bounds = array<i64: 8, 128>}]} {
    %c0 = arith.constant 0 : index
    %c0_0 = arith.constant 0 : index
    %0 = vector.load %arg1[%c0, %c0_0] : memref<8x160xbf16, #tpu.memory_space<vmem>>, vector<8x160xbf16>
    %c0_1 = arith.constant 0 : index
    %c0_2 = arith.constant 0 : index
    %1 = vector.load %arg3[%c0_1, %c0_2] : memref<160x64xbf16, #tpu.memory_space<vmem>>, vector<160x64xbf16>
    %cst = arith.constant dense<0.000000e+00> : vector<8x64xf32>
    %2 = tpu.matmul %0, %1, %cst {dimension_numbers = #tpu.dot_dimension_numbers<[1], [0], [0], [1], [0, 0, 1, 1], [], []>} : vector<8x160xbf16>, vector<160x64xbf16>, vector<8x64xf32> -> vector<8x64xf32>
    %c0_3 = arith.constant 0 : index
    %c0_4 = arith.constant 0 : index
    %3 = vector.load %arg4[%c0_3, %c0_4] : memref<1x64xf32, #tpu.memory_space<vmem>>, vector<1x64xf32>
    %4 = vector.broadcast %3 : vector<1x64xf32> to vector<8x64xf32>
    %5 = arith.addf %2, %4 : vector<8x64xf32>
    %cst_5 = arith.constant 0.000000e+00 : f32
    %6 = vector.broadcast %cst_5 : f32 to vector<8x64xf32>
    %7 = arith.maximumf %5, %6 : vector<8x64xf32>
    %8 = arith.truncf %7 : vector<8x64xf32> to vector<8x64xbf16>
    %c0_6 = arith.constant 0 : index
    %c0_7 = arith.constant 0 : index
    %9 = vector.load %arg5[%c0_6, %c0_7] : memref<64x16xbf16, #tpu.memory_space<vmem>>, vector<64x16xbf16>
    %cst_8 = arith.constant dense<0.000000e+00> : vector<8x16xf32>
    %10 = tpu.matmul %8, %9, %cst_8 {dimension_numbers = #tpu.dot_dimension_numbers<[1], [0], [0], [1], [0, 0, 1, 1], [], []>} : vector<8x64xbf16>, vector<64x16xbf16>, vector<8x16xf32> -> vector<8x16xf32>
    %c0_9 = arith.constant 0 : index
    %c0_10 = arith.constant 0 : index
    %11 = vector.load %arg6[%c0_9, %c0_10] : memref<1x16xf32, #tpu.memory_space<vmem>>, vector<1x16xf32>
    %12 = vector.broadcast %11 : vector<1x16xf32> to vector<8x16xf32>
    %13 = arith.addf %10, %12 : vector<8x16xf32>
    %cst_11 = arith.constant 0.000000e+00 : f32
    %14 = vector.broadcast %cst_11 : f32 to vector<8x16xf32>
    %15 = arith.maximumf %13, %14 : vector<8x16xf32>
    %16 = arith.truncf %15 : vector<8x16xf32> to vector<8x16xbf16>
    %c0_12 = arith.constant 0 : index
    %c0_13 = arith.constant 0 : index
    %17 = vector.load %arg7[%c0_12, %c0_13] : memref<16x128xbf16, #tpu.memory_space<vmem>>, vector<16x128xbf16>
    %cst_14 = arith.constant dense<0.000000e+00> : vector<8x128xf32>
    %18 = tpu.matmul %16, %17, %cst_14 {dimension_numbers = #tpu.dot_dimension_numbers<[1], [0], [0], [1], [0, 0, 1, 1], [], []>} : vector<8x16xbf16>, vector<16x128xbf16>, vector<8x128xf32> -> vector<8x128xf32>
    %c0_15 = arith.constant 0 : index
    %c0_16 = arith.constant 0 : index
    %19 = vector.load %arg8[%c0_15, %c0_16] : memref<1x128xf32, #tpu.memory_space<vmem>>, vector<1x128xf32>
    %20 = vector.broadcast %19 : vector<1x128xf32> to vector<8x128xf32>
    %21 = arith.addf %18, %20 : vector<8x128xf32>
    %c0_17 = arith.constant 0 : index
    %c0_18 = arith.constant 0 : index
    %22 = vector.load %arg11[%c0_17, %c0_18] : memref<8x128xf32, #tpu.memory_space<vmem>>, vector<8x128xf32>
    tpu.vector_store %arg11[%c0_17, %c0_18], %21 {strides = array<i32>} : memref<8x128xf32, #tpu.memory_space<vmem>>, vector<8x128xf32>,
    %23 = tpu.iota {dimensions = array<i32: 1>} : vector<8x128xi32>
    %c4_i32 = arith.constant 4 : i32
    %24 = vector.broadcast %c4_i32 : i32 to vector<8x128xi32>
    %25 = arith.cmpi slt, %23, %24 : vector<8x128xi32>
    %cst_19 = arith.constant -1.000000e+30 : f32
    %26 = vector.broadcast %cst_19 : f32 to vector<8x128xf32>
    %27 = arith.select %25, %21, %26 : vector<8x128xi1>, vector<8x128xf32>
    %cst_20 = arith.constant dense<0xFF800000> : vector<8xf32>
    %28 = vector.multi_reduction <maximumf>, %27, %cst_20 [1] : vector<8x128xf32> to vector<8xf32>
    %29 = vector.shape_cast %28 : vector<8xf32> to vector<8x1xf32>
    %30 = vector.broadcast %29 : vector<8x1xf32> to vector<8x128xf32>
    %31 = arith.subf %27, %30 : vector<8x128xf32>
    %32 = math.exp %31 : vector<8x128xf32>
    %cst_21 = arith.constant dense<0.000000e+00> : vector<8xf32>
    %33 = vector.multi_reduction <add>, %32, %cst_21 [1] : vector<8x128xf32> to vector<8xf32>
    %34 = vector.shape_cast %33 : vector<8xf32> to vector<8x1xf32>
    %35 = math.log %34 : vector<8x1xf32>
    %36 = arith.addf %29, %35 : vector<8x1xf32>
    %37 = vector.broadcast %36 : vector<8x1xf32> to vector<8x128xf32>
    %38 = arith.subf %27, %37 : vector<8x128xf32>
    %c0_22 = arith.constant 0 : index
    %c0_23 = arith.constant 0 : index
    %39 = vector.load %arg2[%c0_22, %c0_23] : memref<8x1xi32, #tpu.memory_space<vmem>>, vector<8x1xi32>
    %40 = tpu.iota {dimensions = array<i32: 0>} : vector<8x1xi32>
    %c8_i32 = arith.constant 8 : i32
    %41 = arith.muli %arg0, %c8_i32 : i32
    %42 = vector.broadcast %41 : i32 to vector<8x1xi32>
    %43 = arith.addi %42, %40 : vector<8x1xi32>
    %c8_i32_24 = arith.constant 8 : i32
    %44 = vector.broadcast %c8_i32_24 : i32 to vector<8x1xi32>
    %45 = arith.cmpi slt, %43, %44 : vector<8x1xi32>
    %46 = vector.broadcast %39 : vector<8x1xi32> to vector<8x128xi32>
    %47 = arith.cmpi eq, %23, %46 : vector<8x128xi32>
    %48 = arith.andi %47, %25 : vector<8x128xi1>
    %cst_25 = arith.constant 0.000000e+00 : f32
    %49 = vector.broadcast %cst_25 : f32 to vector<8x128xf32>
    %50 = arith.select %48, %38, %49 : vector<8x128xi1>, vector<8x128xf32>
    %cst_26 = arith.constant dense<0.000000e+00> : vector<8xf32>
    %51 = vector.multi_reduction <add>, %50, %cst_26 [1] : vector<8x128xf32> to vector<8xf32>
    %52 = vector.shape_cast %51 : vector<8xf32> to vector<8x1xf32>
    %cst_27 = arith.constant 0.000000e+00 : f32
    %53 = vector.broadcast %cst_27 : f32 to vector<8x1xf32>
    %54 = arith.select %45, %52, %53 : vector<8x1xi1>, vector<8x1xf32>
    %55 = vector.shape_cast %54 : vector<8x1xf32> to vector<1x8x1xf32>
    %cst_28 = arith.constant dense<0.000000e+00> : vector<1xf32>
    %56 = vector.multi_reduction <add>, %55, %cst_28 [1, 2] : vector<1x8x1xf32> to vector<1xf32>
    %57 = vector.shape_cast %56 : vector<1xf32> to vector<1x1x1xf32>
    %58 = vector.extract %57[0, 0, 0] : f32 from vector<1x1x1xf32>
    %59 = vector.broadcast %58 : f32 to vector<1x1xf32>
    %cst_29 = arith.constant 0.000000e+00 : f32
    %60 = vector.broadcast %cst_29 : f32 to vector<1x1xf32>
    %61 = arith.subf %60, %59 : vector<1x1xf32>
    %62 = vector.shape_cast %61 : vector<1x1xf32> to vector<1x1xf32>
    %63 = vector.broadcast %62 : vector<1x1xf32> to vector<1x128xf32>
    %c0_30 = arith.constant 0 : index
    %c0_31 = arith.constant 0 : index
    %64 = vector.load %arg9[%c0_30, %c0_31] : memref<1x128xf32, #tpu.memory_space<vmem>>, vector<1x128xf32>
    tpu.vector_store %arg9[%c0_30, %c0_31], %63 {strides = array<i32>} : memref<1x128xf32, #tpu.memory_space<vmem>>, vector<1x128xf32>,
    %65 = vector.broadcast %29 : vector<8x1xf32> to vector<8x128xf32>
    %66 = arith.cmpf oeq, %27, %65 : vector<8x128xf32>
    %67 = arith.andi %66, %25 : vector<8x128xi1>
    %c128_i32 = arith.constant 128 : i32
    %68 = vector.broadcast %c128_i32 : i32 to vector<8x128xi32>
    %69 = arith.select %67, %23, %68 : vector<8x128xi1>, vector<8x128xi32>
    %cst_32 = arith.constant dense<2147483647> : vector<8xi32>
    %70 = vector.multi_reduction <minsi>, %69, %cst_32 [1] : vector<8x128xi32> to vector<8xi32>
    %71 = vector.shape_cast %70 : vector<8xi32> to vector<8x1xi32>
    %c0_33 = arith.constant 0 : index
    %c0_34 = arith.constant 0 : index
    %72 = vector.load %arg10[%c0_33, %c0_34] : memref<8x1xi32, #tpu.memory_space<vmem>>, vector<8x1xi32>
    tpu.vector_store %arg10[%c0_33, %c0_34], %71 {strides = array<i32>} : memref<8x1xi32, #tpu.memory_space<vmem>>, vector<8x1xi32>,
    return
  }
  func.func @transform_0(%arg0: i32) -> (i32, i32) {
    %c0_i32 = arith.constant 0 : i32
    %c0_i32_0 = arith.constant 0 : i32
    return %arg0, %c0_i32 : i32, i32
  }
  func.func @transform_1(%arg0: i32) -> (i32, i32) {
    %c0_i32 = arith.constant 0 : i32
    %c0_i32_0 = arith.constant 0 : i32
    return %arg0, %c0_i32 : i32, i32
  }
  func.func @transform_2(%arg0: i32) -> (i32, i32) {
    %c0_i32 = arith.constant 0 : i32
    %c0_i32_0 = arith.constant 0 : i32
    %c0_i32_1 = arith.constant 0 : i32
    return %c0_i32, %c0_i32_0 : i32, i32
  }
  func.func @transform_3(%arg0: i32) -> (i32, i32) {
    %c0_i32 = arith.constant 0 : i32
    %c0_i32_0 = arith.constant 0 : i32
    %c0_i32_1 = arith.constant 0 : i32
    return %c0_i32, %c0_i32_0 : i32, i32
  }
  func.func @transform_4(%arg0: i32) -> (i32, i32) {
    %c0_i32 = arith.constant 0 : i32
    %c0_i32_0 = arith.constant 0 : i32
    %c0_i32_1 = arith.constant 0 : i32
    return %c0_i32, %c0_i32_0 : i32, i32
  }
  func.func @transform_5(%arg0: i32) -> (i32, i32) {
    %c0_i32 = arith.constant 0 : i32
    %c0_i32_0 = arith.constant 0 : i32
    %c0_i32_1 = arith.constant 0 : i32
    return %c0_i32, %c0_i32_0 : i32, i32
  }
  func.func @transform_6(%arg0: i32) -> (i32, i32) {
    %c0_i32 = arith.constant 0 : i32
    %c0_i32_0 = arith.constant 0 : i32
    %c0_i32_1 = arith.constant 0 : i32
    return %c0_i32, %c0_i32_0 : i32, i32
  }
  func.func @transform_7(%arg0: i32) -> (i32, i32) {
    %c0_i32 = arith.constant 0 : i32
    %c0_i32_0 = arith.constant 0 : i32
    %c0_i32_1 = arith.constant 0 : i32
    return %c0_i32, %c0_i32_0 : i32, i32
  }
  func.func @transform_8(%arg0: i32) -> (i32, i32) {
    %c0_i32 = arith.constant 0 : i32
    %c0_i32_0 = arith.constant 0 : i32
    return %arg0, %c0_i32 : i32, i32
  }
  func.func @transform_9(%arg0: i32) -> (i32, i32) {
    %c0_i32 = arith.constant 0 : i32
    %c0_i32_0 = arith.constant 0 : i32
    return %arg0, %c0_i32 : i32, i32
  }
  func.func @transform_10(%arg0: i32) -> (i32, i32) {
    %c0_i32 = arith.constant 0 : i32
    %c0_i32_0 = arith.constant 0 : i32
    return %arg0, %c0_i32 : i32, i32
  }
}

</mosaic_0001>

<bundles_post_ra>
// kernel: tpu_custom_call.1
= control target key start
LH: loop header
LB: loop body
LE: loop exit
PB: predicated region body
PF: predicated region fallthrough
CT: control target
= control target key end

     0   :  { %16 = vsyncpa [#allocation3], 0  ;;  %v541_v1 = vmov 0   ;;  %v542_v3 = vmov 0.0   ;;  %vm129_vm0 = vcmask 261120   ;;  %s693_s0 = inlined_call_operand.vmem [shape: bf16[8,160], index: 0, kind: input, shape index: {}]   ;;  %s694_s1 = inlined_call_operand.vmem [shape: s32[8,1], index: 1, kind: input, shape index: {}]   ;;  %s695_s2 = inlined_call_operand.vmem [shape: bf16[160,64], index: 2, kind: input, shape index: {}]   ;;  %s696_s3 = inlined_call_operand.vmem [shape: f32[1,64], index: 3, kind: input, shape index: {}]   ;;  %s697_s4 = inlined_call_operand.vmem [shape: bf16[64,16], index: 4, kind: input, shape index: {}]   ;;  %s698_s5 = inlined_call_operand.vmem [shape: f32[1,16], index: 5, kind: input, shape index: {}]   ;;  %s699_s6 = inlined_call_operand.vmem [shape: bf16[16,128], index: 6, kind: input, shape index: {}]   ;;  %s700_s7 = inlined_call_operand.vmem [shape: f32[1,128], index: 7, kind: input, shape index: {}]   ;;  %s701_s8 = inlined_call_operand.hbm [shape: f32[1,128], index: 8, kind: output, shape index: {0}]   ;;  %s702_s9 = inlined_call_operand.vmem [shape: s32[8,1], index: 9, kind: output, shape index: {1}]   ;;  %s703_s10 = inlined_call_operand.hbm [shape: f32[8,128], index: 10, kind: output, shape index: {2}]  }
   0x1   :  { %v472_v0 = vld [vmem:[%s695_s2] sm:$0xff]   ;;  %133 = vmatprep.subr.bf16.mxu0 %v541_v1  ;;  %470 = vset.pattern.permute.xlu1 %v541_v1  ;;  %v473_v2 = vld [vmem:[%s695_s2 + $0x8] sm:$0xff]   ;;  %v474_v4 = vld [vmem:[%s695_s2 + $0x10] sm:$0xff]  }
   0x2   :  { %134 = vmatpush1.bf16.msra.mxu0 %v472_v0  ;;  %471 = vset.pattern.permute.xlu0 %v541_v1  ;;  %v475_v5 = vld [vmem:[%s695_s2 + $0x18] sm:$0xff]   ;;  %v35_v6 = vld [vmem:[%s693_s0] sm:$0xff]  ;;  %v485_v10 = vld [vmem:[%s697_s4 + $0x8] sm:$0xff]  }
   0x3   :  { %135 = vmatprep.subr.bf16.mxu0 %v541_v1  ;;  %445 = vmatprep.subr.bf16.mxu1 %v542_v3  ;;  %v417_v7 = vcombine.high %v35_v6, %v35_v6  ;;  %v484_v8 = vld [vmem:[%s697_s4] sm:$0xff]  }
   0x4   :  { %v476_v9 = vld [vmem:[%s695_s2 + $0x20] sm:$0xff]   ;;  %446 = vmatpush3.bf16.msra.mxu1 %v484_v8 }
   0x5   :  { %428 = vmatprep.mubr.msk.bf16.mxu0 %vm129_vm0, %v417_v7  ;;  %447 = vmatprep.subr.bf16.mxu1 %v542_v3 }
   0x6   :  { %136 = vmatpush1.bf16.msra.mxu0 %v473_v2 }
   0x7   :  { %137 = vmatprep.subr.bf16.mxu0 %v541_v1 }
   0xa   :  { %138 = vmatpush1.bf16.msra.mxu0 %v474_v4 }
   0xb   :  { %139 = vmatprep.subr.bf16.mxu0 %v541_v1 }
   0xe   :  { %140 = vmatpush1.bf16.msra.mxu0 %v475_v5 }
   0xf   :  { %17 = vsyncpa [#allocation5], 0  ;;  %141 = vmatprep.subr.bf16.mxu0 %v541_v1  ;;  %448 = vmatpush3.bf16.msra.mxu1 %v485_v10  ;;  %v477_v11 = vld [vmem:[%s695_s2 + $0x28] sm:$0xff]   ;;  %v478_v12 = vld [vmem:[%s695_s2 + $0x30] sm:$0xff]   ;;  %v416_v16 = vcombine.low %v35_v6, %v35_v6  ;;  %vm543_vm1 = vmmov 0   ;;  %vm214_vm2 = vcmask 523264   ;;  %v320_v36 = vlaneseq }
  0x10   :  { %449 = vmatprep.subr.bf16.mxu1 %v542_v3  ;;  %v479_v13 = vld [vmem:[%s695_s2 + $0x38] sm:$0xff]   ;;  %v480_v14 = vld [vmem:[%s695_s2 + $0x40] sm:$0xff]   ;;  %v481_v15 = vld [vmem:[%s695_s2 + $0x48] sm:$0xff]   ;;  %453 = vmatprep.mubr.msk.bf16.mxu1 %vm543_vm1, %v542_v3  ;;  %vm275_vm3 = vcmask 130048   ;;  %vm351_vm9 = vcmask 7168  }
  0x11   :  { %v486_v17 = vld [vmem:[%s697_s4 + $0x10] sm:$0xff]   ;;  %v487_v18 = vld [vmem:[%s697_s4 + $0x18] sm:$0xff]   ;;  %v415_v19 = vld [vmem:[%s696_s3] ss:$0 sm:$0xff]  ;;  %v321_v37 = vand.u32 127, %v320_v36 }
  0x12   :  { %142 = vmatpush1.bf16.msra.mxu0 %v476_v9  ;;  %v488_v26 = vld [vmem:[%s699_s6] sm:$0xff]  }
  0x13   :  { %143 = vmatprep.subr.bf16.mxu0 %v541_v1  ;;  %450 = vmatpush3.bf16.msra.mxu1 %v486_v17  ;;  %v429_v28 = vld [vmem:[%s698_s5] ss:$0 sm:$0xff]  ;;  %vm322_vm4 = vcmp.lt.s32.totalorder %v321_v37, 4 }
  0x14   :  { %451 = vmatprep.subr.bf16.mxu1 %v542_v3  ;;  %v435_v38 = vld [vmem:[%s700_s7] ss:$0 sm:$0xff] }
  0x15   :  { %v335_v45 = vld [vmem:[%s694_s1] sm:$0xff]  ;;  %s544_s1 = smov [#allocation4]  }
  0x16   :  { %144 = vmatpush1.bf16.msra.mxu0 %v477_v11  ;;  %343 = vperm.xlu1 %470, %v335_v45   ;;  %s401_s7 = sshll.u32 %s544_s1, 4  ;;  %s402_s7 = int_to_ptr.vmem [resolvable:$true] %s401_s7 }
  0x17   :  { %145 = vmatprep.subr.bf16.mxu0 %v541_v1  ;;  %452 = vmatpush3.bf16.msra.mxu1 %v487_v18  ;;  %s493_s27 = scalar_lea.vmem %s402_s7, 128  ;;  %p498_p1 = scmp.lt.s32.totalorder %s402_s7, %s402_s7 }
  0x18   :  { %457 = vmatprep.subr.bf16.mxu1 %v542_v3  ;;  %p494_p0 = scmp.ne.s32.totalorder %s402_s7, %s493_s27  ;;  %p499_p2 = scmp.lt.s32.totalorder %s493_s27, %s493_s27 }
  0x1a   :  { %146 = vmatpush1.bf16.msra.mxu0 %v478_v12  ;;  %p500_p3 = por %p499_p2, %p498_p1 }
  0x1b   :  { %147 = vmatprep.subr.bf16.mxu0 %v541_v1 }
  0x1c   :  { %p501_p4 = pnand %p500_p3, %p494_p0 }
  0x1e   :  { %148 = vmatpush1.bf16.msra.mxu0 %v479_v13 }
  0x1f   :  { %149 = vmatprep.subr.bf16.mxu0 %v541_v1 }
  0x22   :  { %150 = vmatpush1.bf16.msra.mxu0 %v480_v14 }
  0x23   :  { %151 = vmatprep.subr.bf16.mxu0 %v541_v1 }
  0x26   :  { %152 = vmatpush1.bf16.msra.mxu0 %v481_v15 }
  0x29   :  { %166 = vmatmul.mubr.bf16.vlgmr.msra.gmra.mrb[0].mxu0 %v416_v16 }
  0x95   :  { %v344_v54 = vpop.permute.xlu1 %343 }
  0x96   :  { %vm345_vm7 = vcmp.eq.s32.totalorder %v321_v37, %v344_v54 }
  0x97   :  { %vm346_vm8 = vmand %vm345_vm7, %vm322_vm4 }
  0xfc   :  { %v167_v20 = vpop.f32.mrb[0].mxu0 }
  0xfd   :  { %v168_v21 = vadd.f32 %v415_v19, %v167_v20  ;;  %v169_v22 = vpop.f32.mrb[1].mxu0 }
  0xfe   :  { %v170_v23 = vpop.f32.mrb[2].mxu0 }
  0xff   :  { %v173_v24 = vmax.f32 %v168_v21, 0.0  ;;  %v171_v25 = vpop.f32.mrb[3].mxu0 }
 0x101   :  { %v174_v27 = vpack.c.bf16 %v173_v24, %v173_v24 }
 0x103   :  { %454 = vmatmul.mubr.msk.bf16.vlgmr.msra.gmra.mrb[0].mxu1 %vm214_vm2, %v174_v27 }
 0x104   :  { %458 = vmatpush3.bf16.msra.mxu1 %v488_v26  ;;  %459 = vmatprep.mubr.msk.bf16.mxu1 %vm543_vm1, %v542_v3 }
 0x1d6   :  { %v252_v29 = vpop.f32.mrb[0].mxu1 }
 0x1d7   :  { %v253_v30 = vadd.f32 %v429_v28, %v252_v29  ;;  %v455_v31 = vpop.f32.mrb[1].mxu1 }
 0x1d8   :  { %v255_v32 = vpop.f32.mrb[2].mxu1 }
 0x1d9   :  { %v258_v33 = vmax.f32 %v253_v30, 0.0  ;;  %v456_v34 = vpop.f32.mrb[3].mxu1 }
 0x1db   :  { %v259_v35 = vpack.c.bf16 %v258_v33, %v258_v33 }
 0x1dd   :  { %460 = vmatmul.mubr.msk.bf16.vlgmr.msra.gmra.mrb[4].mxu1 %vm275_vm3, %v259_v35 }
 0x2b0   :  { %v313_v39 = vpop.f32.mrb[4].mxu1 }
 0x2b1   :  { %v314_v40 = vadd.f32 %v435_v38, %v313_v39  ;;  %v461_v41 = vpop.f32.mrb[5].mxu1 }
 0x2b2   :  { %v316_v42 = vpop.f32.mrb[6].mxu1 }
 0x2b3   :  { %v323_v43 = vsel %vm322_vm4, %v314_v40, -1e+30  ;;  %319 = vst [vmem:[#allocation4] sm:$0xff] %v314_v40  ;;  %v462_v44 = vpop.f32.mrb[7].mxu1 }
 0x2b4   :  { %324 = vmax.xlane.f32.xlu0 %v323_v43 }
 0x341   :  { %v325_v46 = vpop.xlane.xlu0 %324 }
 0x342   :  { %v326_v47 = vsub.f32 %v323_v43, %v325_v46  ;;  %vm365_vm5 = vcmp.eq.f32.partialorder %v323_v43, %v325_v46 }
 0x343   :  { %vm366_vm6 = vmand %vm365_vm5, %vm322_vm4 }
 0x344   :  { %v327_v48 = vmul.f32 1.442695, %v326_v47  ;;  %v367_v49 = vsel %vm366_vm6, %v321_v37, 128 }
 0x345   :  { %v369_v50 = vshra.s32 %v367_v49, 16  ;;  %v368_v61 = vand.u32 65535, %v367_v49 }
 0x346   :  { %489 = vpow2.f32 %v327_v48 }
 0x347   :  { %v371_v52 = vcvt.s32.f32 %v369_v50  ;;  %v370_v0 = vcvt.s32.f32 %v368_v61 }
 0x350   :  { %v490_v51 = vpop.eup %489 }
 0x351   :  { %329 = vadd.xlane.f32.xlu0 %v490_v51 }
 0x355   :  { %372 = vmin.xlane.f32.xlu0 %v371_v52 }
 0x3de   :  { %v330_v53 = vpop.xlane.xlu0 %329 }
 0x3df   :  { %491 = vlog2.f32 %v330_v53 }
 0x3e2   :  { %v373_v60 = vpop.xlane.xlu0 %372 }
 0x3e3   :  { %vm374_vm10 = vcmp.eq.f32.partialorder %v371_v52, %v373_v60 }
 0x3e4   :  { %v375_v1 = vsel %vm374_vm10, %v370_v0, inf }
 0x3e9   :  { %v492_v55 = vpop.eup %491 }
 0x3ea   :  { %v332_v56 = vmul.f32 0.6931472, %v492_v55 }
 0x3ec   :  { %v333_v57 = vadd.f32 %v332_v56, %v325_v46 }
 0x3ee   :  { %v334_v58 = vsub.f32 %v323_v43, %v333_v57 }
 0x3f0   :  { %v347_v59 = vsel %vm346_vm8, %v334_v58, 0.0 }
 0x3f1   :  { %348 = vadd.xlane.f32.xlu1 %v347_v59 }
 0x47e   :  { %v349_v62 = vpop.xlane.xlu1 %348 }
 0x47f   :  { %v352_v63 = vsel %vm351_vm9, %v349_v62, 0.0 }
 0x480   :  { %353 = vadd.xlane.f32.xlu0 %v352_v63 }
 0x484   :  { %376 = vmin.xlane.f32.xlu0 %v375_v1 }
 0x485   :  { %504 = shalt.err (!%p501_p4)
}
 0x486   :  { %s505_s29 = scalar_lea.hbm %s703_s10, 128 }
 0x487   :  { %p506_p5 = scmp.ne.s32.totalorder %s703_s10, %s505_s29  ;;  %p509_p6 = scmp.lt.u32.totalorder %s505_s29, %s703_s10 }
 0x489   :  { %p511_p7 = pnand %p509_p6, %p506_p5 }
 0x48b   :  { %514 = shalt.err (!%p511_p7)
}
 0x48c   :  { %404 = dma.vmem_to_hbm [thread:$0]  %s402_s7, 128, %s703_s10, [#allocation5]   ;;  %v379_v3 = vcvt.f32.s32 %v373_v60 }
 0x48d   :  { %s545_s18 = smov [#allocation2]  }
 0x48e   :  { %v380_v7 = vshll.u32 %v379_v3, 16  ;;  %s389_s10 = sshll.u32 %s545_s18, 4  ;;  %s390_s10 = int_to_ptr.vmem [resolvable:$true] %s389_s10 }
 0x48f   :  { %s515_s20 = scalar_lea.vmem %s390_s10, 16  ;;  %s519_s21 = scalar_lea.vmem %s390_s10, 32 }
 0x490   :  { %p516_p8 = scmp.ne.s32.totalorder %s390_s10, %s515_s20  ;;  %p520_p9 = scmp.lt.s32.totalorder %s390_s10, %s390_s10 }
 0x491   :  { %p521_p10 = scmp.lt.s32.totalorder %s519_s21, %s515_s20 }
 0x493   :  { %p522_p11 = por %p521_p10, %p520_p9 }
 0x495   :  { %p523_p12 = pnand %p522_p11, %p516_p8 }
 0x50d   :  { %v354_v2 = vpop.xlane.xlu0 %353 }
 0x50e   :  { %v355_v4 = vrot.slane %v354_v2, 4 }
 0x510   :  { %v356_v5 = vadd.f32 %v355_v4, %v354_v2 }
 0x511   :  { %v377_v6 = vpop.xlane.xlu0 %376 }
 0x512   :  { %v357_v8 = vrot.slane %v356_v5, 2  ;;  %v378_v9 = vcvt.f32.s32 %v377_v6 }
 0x514   :  { %v381_v10 = vadd.s32 %v380_v7, %v378_v9  ;;  %v358_v11 = vadd.f32 %v357_v8, %v356_v5 }
 0x516   :  { %382 = vst.msk [vmem:[%s702_s9] sm:$0xff] %vm351_vm9, %v381_v10  ;;  %v359_v12 = vrot.slane %v358_v11, 1 }
 0x518   :  { %v360_v13 = vadd.f32 %v359_v12, %v358_v11 }
 0x51a   :  { %463 = vpush %v360_v13 }
 0x54b   :  { %s464_s19 = spop %463 }
 0x54c   :  { %v362_v14 = vstv %s464_s19 }
 0x54d   :  { %v363_v15 = vsub.f32 0.0, %v362_v14 }
 0x54f   :  { %364 = vst [vmem:[#allocation2] sm:$0x1] %v363_v15 }
 0x550   :  { %526 = shalt.err (!%p523_p12)
}
 0x551   :  { %s527_s2 = scalar_lea.hbm %s701_s8, 16 }
 0x552   :  { %p528_p13 = scmp.ne.s32.totalorder %s701_s8, %s527_s2  ;;  %p531_p0 = scmp.lt.u32.totalorder %s527_s2, %s701_s8 }
 0x554   :  { %p533_p1 = pnand %p531_p0, %p528_p13 }
 0x556   :  { %536 = shalt.err (!%p533_p1)
}
 0x557   :  { %392 = dma.vmem_to_hbm [thread:$0]  %s390_s10, 16, %s701_s8, [#allocation3]  }
 0x558   :  { %537 = dma.done.wait [#allocation3], 16  }
 0x559   :  { %538 = vsyncadd [#allocation3], 4294967280 }
 0x55a   :  { %539 = dma.done.wait [#allocation5], 128  }
 0x55b   :  { %540 = vsyncadd [#allocation5], 4294967168 }
 0x55c   :  { %413 = vsyncpa [#allocation3], 1 }
 0x55d   :  { %414 = vsyncpa [#allocation5], 1 }

</bundles_post_ra>
